<compile_context>
chip_gen: v7x
topology: tpu7x:2x2x1
jax: 0.10.0
libtpu: 0.0.40
codegen_flags: <defaults>
</compile_context>

<pallas_src>
import functools

import jax
import jax.numpy as jnp
from jax import lax
from jax.experimental import pallas as pl
from jax.experimental.pallas import tpu as pltpu


LAYER_CFG = ((3, 64, 1), (4, 128, 2), (6, 256, 2), (3, 512, 2))  # (blocks, mid_channels, first_stride)


def _round_up(a, b):
    return (a + b - 1) // b * b


# -----------------------------------------------------------------------------------------------
# Fused GEMM + BatchNorm(scale/shift) + optional residual + optional ReLU Pallas kernel
# -----------------------------------------------------------------------------------------------
def _fused_matmul_kernel(x_ref, w_ref, scale_ref, shift_ref, *rest, relu, has_residual):
    if has_residual:
        res_ref, o_ref = rest
    else:
        (o_ref,) = rest

    k = pl.program_id(2)

    @pl.when(k == 0)
    def _():
        o_ref[...] = jnp.zeros_like(o_ref)

    # bf16 x bf16 -> f32 MXU matmul, accumulated directly into the resident f32 output block.
    o_ref[...] += jnp.dot(x_ref[...], w_ref[...], preferred_element_type=jnp.float32)

    @pl.when(k == pl.num_programs(2) - 1)
    def _():
        y = o_ref[...] * scale_ref[...] + shift_ref[...]
        if has_residual:
            y = y + res_ref[...]
        if relu:
            y = jnp.maximum(y, 0.0)
        o_ref[...] = y


def fused_matmul(x, w_packed, scale_row, shift_row, *, n_out, residual=None, relu=False,
                 use_pallas=True):
    """y = relu?((x @ W) * scale + shift (+ residual))[:, :n_out].

    x:        (M, K) f32 activations (cast to bf16 + padded here; cheap, tiny M).
    w_packed: (Kp, Np) bf16, pre-transposed / pre-padded at parameter-pack time.
    scale_row/shift_row: (1, Np) f32, pre-padded (BN fold or fc bias).
    residual: (M, n_out) f32 or None.
    """
    M, K = x.shape
    Kp, Np = w_packed.shape
    assert K <= Kp and n_out <= Np

    if not use_pallas:  # pure-XLA path, same bf16 operand math (correctness reference only)
        xb = jnp.pad(x, ((0, 0), (0, Kp - K))).astype(jnp.bfloat16)
        y = jnp.dot(xb, w_packed, preferred_element_type=jnp.float32)[:, :n_out]
        y = y * scale_row[0, :n_out] + shift_row[0, :n_out]
        if residual is not None:
            y = y + residual
        if relu:
            y = jnp.maximum(y, 0.0)
        return y

    TM = min(256, _round_up(M, 8))                   # row tile (sublane-aligned)
    Mp = _round_up(M, TM)
    TK = min(512, Kp)                                # Kp is a multiple of TK by construction
    TN = 1024 if (Np > 1024 and Np % 1024 == 0) else Np   # N-parallel axis (v7x 2 TCs, smaller blocks)

    xb = jnp.pad(x, ((0, Mp - M), (0, Kp - K))).astype(jnp.bfloat16)

    inputs = [xb, w_packed, scale_row, shift_row]
    in_specs = [
        pl.BlockSpec((TM, TK), lambda i, j, k: (i, k)),   # activations: tiled over M and K
        pl.BlockSpec((TK, TN), lambda i, j, k: (k, j)),   # weight: tiled over K and N (pre-packed bf16)
        pl.BlockSpec((1, TN), lambda i, j, k: (0, j)),    # BN scale: resident, lane-dense
        pl.BlockSpec((1, TN), lambda i, j, k: (0, j)),    # BN shift / bias: resident, lane-dense
    ]
    has_residual = residual is not None
    if has_residual:
        rp = jnp.pad(residual, ((0, Mp - M), (0, Np - n_out)))
        inputs.append(rp)
        in_specs.append(pl.BlockSpec((TM, TN), lambda i, j, k: (i, j)))

    kernel = functools.partial(_fused_matmul_kernel, relu=relu, has_residual=has_residual)

    out = pl.pallas_call(
        kernel,
        out_shape=jax.ShapeDtypeStruct((Mp, Np), jnp.float32),
        grid_spec=pltpu.PrefetchScalarGridSpec(
            num_scalar_prefetch=0,
            grid=(Mp // TM, Np // TN, Kp // TK),          # (M: parallel, N: parallel, K: reduction)
            in_specs=in_specs,
            out_specs=pl.BlockSpec((TM, TN), lambda i, j, k: (i, j)),
        ),
        compiler_params=pltpu.CompilerParams(
            dimension_semantics=("parallel", "parallel", "arbitrary"),
        ),
    )(*inputs)
    return out[:M, :n_out]


# -----------------------------------------------------------------------------------------------
# One-time parameter packing (outside jit): BN fold, transpose to (K, N), pad, cast to bf16
# -----------------------------------------------------------------------------------------------
def _bn_fold(bn, eps=1e-5):
    scale = bn["gamma"] / jnp.sqrt(bn["var"] + eps)
    shift = bn["beta"] - bn["mean"] * scale
    return scale, shift


def _pack_gemm(w2d_kn, scale, shift):
    """w2d_kn: (K, N) f32 -> padded bf16 (Kp, Np); scale/shift: (N,) -> (1, Np) f32."""
    K, N = w2d_kn.shape
    Np = _round_up(N, 128)
    TK = min(512, _round_up(K, 128))
    Kp = _round_up(K, TK)
    return {
        "w": jnp.pad(w2d_kn, ((0, Kp - K), (0, Np - N))).astype(jnp.bfloat16),
        "scale": jnp.pad(scale, (0, Np - N)).reshape(1, Np).astype(jnp.float32),
        "shift": jnp.pad(shift, (0, Np - N)).reshape(1, Np).astype(jnp.float32),
    }


def _pack_conv(w_oihw, bn):
    cout, cin, kh, kw = w_oihw.shape
    scale, shift = _bn_fold(bn)
    w2d = jnp.transpose(w_oihw.reshape(cout, cin * kh * kw))   # (Cin*KH*KW, Cout), channel-major
    return _pack_gemm(w2d, scale, shift)


def prepare_params(params):
    packed = {"stem": _pack_conv(params["stem_w"], params["stem_bn"]), "layers": []}
    for layer_params in params["layers"]:
        layer_packed = []
        for blk in layer_params:
            pb = {"conv1": _pack_conv(blk["conv1_w"], blk["bn1"]),
                  "conv2": _pack_conv(blk["conv2_w"], blk["bn2"]),
                  "conv3": _pack_conv(blk["conv3_w"], blk["bn3"])}
            if "down_w" in blk:
                pb["down"] = _pack_conv(blk["down_w"], blk["down_bn"])
            layer_packed.append(pb)
        packed["layers"].append(layer_packed)
    ones = jnp.ones((params["fc_b"].shape[0],), jnp.float32)
    packed["fc"] = _pack_gemm(jnp.transpose(params["fc_w"]), ones, params["fc_b"])
    return packed


# -----------------------------------------------------------------------------------------------
# ResNet-50 building blocks (all heavy math funnels into fused_matmul)
# -----------------------------------------------------------------------------------------------
def conv_bn_act(x, packed, *, ksize, stride, padding, n_out, relu, residual=None, use_pallas=True):
    """x: (N, H, W, Cin) NHWC f32; packed: pre-packed GEMM dict; static conv hyper-params."""
    n, h, w, cin = x.shape
    if ksize == 1:
        assert padding == 0
        if stride > 1:
            x = x[:, ::stride, ::stride, :]
        ho, wo = x.shape[1], x.shape[2]
        x2d = x.reshape(n * ho * wo, cin)
    else:
        patches = lax.conv_general_dilated_patches(
            x, (ksize, ksize), (stride, stride),
            padding=((padding, padding), (padding, padding)),
            dimension_numbers=("NHWC", "HWIO", "NHWC"),
        )                                                # (N, Ho, Wo, Cin*KH*KW), channel-major order
        _, ho, wo, kdim = patches.shape
        x2d = patches.reshape(n * ho * wo, kdim)
    res2d = None if residual is None else residual.reshape(n * ho * wo, n_out)
    y2d = fused_matmul(x2d, packed["w"], packed["scale"], packed["shift"],
                       n_out=n_out, residual=res2d, relu=relu, use_pallas=use_pallas)
    return y2d.reshape(n, ho, wo, n_out)


def max_pool_3x3_s2(x):
    return lax.reduce_window(
        x, -jnp.inf, lax.max,
        window_dimensions=(1, 3, 3, 1), window_strides=(1, 2, 2, 1),
        padding=((0, 0), (1, 1), (1, 1), (0, 0)))


@functools.partial(jax.jit, static_argnames=("use_pallas",))
def brain_tumor_classifier_forward(packed_params, x_nchw, *, use_pallas=True):
    x = jnp.transpose(x_nchw, (0, 2, 3, 1)).astype(jnp.float32)   # NCHW -> NHWC
    # stem: conv7x7/2 + BN + ReLU + maxpool3x3/2
    x = conv_bn_act(x, packed_params["stem"], ksize=7, stride=2, padding=3, n_out=64,
                    relu=True, use_pallas=use_pallas)
    x = max_pool_3x3_s2(x)
    # 4 stages of bottleneck blocks
    for layer_packed, (_, mid, first_stride) in zip(packed_params["layers"], LAYER_CFG):
        out_c = 4 * mid
        for bi, blk in enumerate(layer_packed):
            stride = first_stride if bi == 0 else 1
            identity = x
            out = conv_bn_act(x, blk["conv1"], ksize=1, stride=1, padding=0, n_out=mid,
                              relu=True, use_pallas=use_pallas)
            out = conv_bn_act(out, blk["conv2"], ksize=3, stride=stride, padding=1, n_out=mid,
                              relu=True, use_pallas=use_pallas)
            if "down" in blk:
                identity = conv_bn_act(x, blk["down"], ksize=1, stride=stride, padding=0,
                                       n_out=out_c, relu=False, use_pallas=use_pallas)
            # conv3 + BN + residual add + ReLU fused into one Pallas GEMM epilogue
            x = conv_bn_act(out, blk["conv3"], ksize=1, stride=1, padding=0, n_out=out_c,
                            relu=True, residual=identity, use_pallas=use_pallas)
    feat = jnp.mean(x, axis=(1, 2))                                # global average pool -> (N, 2048)
    logits = fused_matmul(feat, packed_params["fc"]["w"], packed_params["fc"]["scale"],
                          packed_params["fc"]["shift"], n_out=2, relu=False,
                          use_pallas=use_pallas)                   # fc: 2048 -> 2 (lane-padded to 128)
    return logits


# -----------------------------------------------------------------------------------------------
# Deterministic parameter construction (resnet50(pretrained=False) style init, BN at defaults)
# -----------------------------------------------------------------------------------------------
def make_params(key):
    keys = iter(jax.random.split(key, 128))

    def conv_w(cout, cin, kh, kw):
        fan_in = cin * kh * kw
        std = (2.0 / fan_in) ** 0.5
        return std * jax.random.normal(next(keys), (cout, cin, kh, kw), jnp.float32)

    def bn(c):
        return {"gamma": jnp.ones((c,), jnp.float32), "beta": jnp.zeros((c,), jnp.float32),
                "mean": jnp.zeros((c,), jnp.float32), "var": jnp.ones((c,), jnp.float32)}

    params = {"stem_w": conv_w(64, 3, 7, 7), "stem_bn": bn(64), "layers": []}
    in_c = 64
    for (nblocks, mid, first_stride) in LAYER_CFG:
        out_c = 4 * mid
        blocks = []
        for bi in range(nblocks):
            stride = first_stride if bi == 0 else 1
            blk = {"conv1_w": conv_w(mid, in_c, 1, 1), "bn1": bn(mid),
                   "conv2_w": conv_w(mid, mid, 3, 3), "bn2": bn(mid),
                   "conv3_w": conv_w(out_c, mid, 1, 1), "bn3": bn(out_c)}
            if stride != 1 or in_c != out_c:
                blk["down_w"] = conv_w(out_c, in_c, 1, 1)
                blk["down_bn"] = bn(out_c)
            blocks.append(blk)
            in_c = out_c
        params["layers"].append(blocks)
    bound = 1.0 / (in_c ** 0.5)
    params["fc_w"] = jax.random.uniform(next(keys), (2, in_c), jnp.float32, -bound, bound)
    params["fc_b"] = jax.random.uniform(next(keys), (2,), jnp.float32, -bound, bound)
    return params


if __name__ == "__main__":
    root = jax.random.PRNGKey(0)
    k_params, k_x, k_unit = jax.random.split(root, 3)

    params = make_params(k_params)
    packed = prepare_params(params)                 # one-time weight pack (outside the jitted forward)
    x = jax.random.normal(k_x, (2, 3, 32, 32), jnp.float32)   # small NCHW image batch

    # --- tight unit check of the Pallas fused GEMM kernel (non-aligned shape, residual + relu) ---
    ka, kb, kc, kd, ke = jax.random.split(k_unit, 5)
    M, K, N = 96, 300, 72
    a = jax.random.normal(ka, (M, K), jnp.float32)
    w = 0.05 * jax.random.normal(kb, (K, N), jnp.float32)
    sc = jax.random.uniform(kc, (N,), jnp.float32, 0.5, 1.5)
    sh = 0.1 * jax.random.normal(kd, (N,), jnp.float32)
    r = jax.random.normal(ke, (M, N), jnp.float32)
    pk = _pack_gemm(w, sc, sh)
    y_pal = fused_matmul(a, pk["w"], pk["scale"], pk["shift"], n_out=N, residual=r, relu=True,
                         use_pallas=True)
    y_ref = fused_matmul(a, pk["w"], pk["scale"], pk["shift"], n_out=N, residual=r, relu=True,
                         use_pallas=False)
    jax.block_until_ready(y_pal)
    rel = jnp.linalg.norm(y_pal - y_ref) / (jnp.linalg.norm(y_ref) + 1e-6)
    assert float(rel) < 2e-2, f"fused GEMM kernel mismatch: rel={float(rel):.3e}"

    # --- full BrainTumorClassifier forward through the Pallas kernels ---
    logits = brain_tumor_classifier_forward(packed, x, use_pallas=True)
    jax.block_until_ready(logits)
    assert logits.shape == (2, 2)
    assert bool(jnp.all(jnp.isfinite(logits)))

    # end-to-end sanity vs. the pure-XLA path (identical bf16 operand math, so this is tight-ish,
    # but keep a loose bound for accumulation-order differences over 53 conv layers)
    logits_ref = brain_tumor_classifier_forward(packed, x, use_pallas=False)
    rel_net = jnp.linalg.norm(logits - logits_ref) / (jnp.linalg.norm(logits_ref) + 1e-6)
    assert float(rel_net) < 0.2, f"forward mismatch vs reference: rel={float(rel_net):.3e}"

    print("KERNEL_OK")
</pallas_src>

<mosaic_0001>
module attributes {stable_mosaic.version = 11 : i64} {
  func.func @_fused_matmul_kernel(%arg0: i32, %arg1: i32, %arg2: i32, %arg3: memref<96x384xbf16, #tpu.memory_space<vmem>>, %arg4: memref<384x128xbf16, #tpu.memory_space<vmem>>, %arg5: memref<1x128xf32, #tpu.memory_space<vmem>>, %arg6: memref<1x128xf32, #tpu.memory_space<vmem>>, %arg7: memref<96x128xf32, #tpu.memory_space<vmem>>, %arg8: memref<96x128xf32, #tpu.memory_space<vmem>>) attributes {dimension_semantics = [#tpu.dimension_semantics<parallel>, #tpu.dimension_semantics<parallel>, #tpu.dimension_semantics<arbitrary>], iteration_bounds = array<i64: 1, 1, 1>, scalar_prefetch = 0 : i64, scratch_operands = 0 : i64, tpu.core_type = #tpu.core_type<tc>, window_params = [{transform_indices = @transform_0, window_bounds = array<i64: 96, 384>}, {transform_indices = @transform_1, window_bounds = array<i64: 384, 128>}, {transform_indices = @transform_2, window_bounds = array<i64: 1, 128>}, {transform_indices = @transform_3, window_bounds = array<i64: 1, 128>}, {transform_indices = @transform_4, window_bounds = array<i64: 96, 128>}, {transform_indices = @transform_5, window_bounds = array<i64: 96, 128>}]} {
    %c0_i32 = arith.constant 0 : i32
    %0 = arith.cmpi eq, %arg2, %c0_i32 : i32
    %1 = arith.extui %0 : i1 to i32
    %c0_i32_0 = arith.constant 0 : i32
    %2 = arith.cmpi ne, %1, %c0_i32_0 : i32
    scf.if %2 {
      %cst_10 = arith.constant 0.000000e+00 : f32
      %12 = vector.broadcast %cst_10 : f32 to vector<96x128xf32>
      %c0_11 = arith.constant 0 : index
      %c0_12 = arith.constant 0 : index
      %13 = vector.load %arg8[%c0_11, %c0_12] : memref<96x128xf32, #tpu.memory_space<vmem>>, vector<96x128xf32>
      tpu.vector_store %arg8[%c0_11, %c0_12], %12 {strides = array<i32>} : memref<96x128xf32, #tpu.memory_space<vmem>>, vector<96x128xf32>,
    } else {
    }
    %c0 = arith.constant 0 : index
    %c0_1 = arith.constant 0 : index
    %3 = vector.load %arg8[%c0, %c0_1] : memref<96x128xf32, #tpu.memory_space<vmem>>, vector<96x128xf32>
    %c0_2 = arith.constant 0 : index
    %c0_3 = arith.constant 0 : index
    %4 = vector.load %arg3[%c0_2, %c0_3] : memref<96x384xbf16, #tpu.memory_space<vmem>>, vector<96x384xbf16>
    %c0_4 = arith.constant 0 : index
    %c0_5 = arith.constant 0 : index
    %5 = vector.load %arg4[%c0_4, %c0_5] : memref<384x128xbf16, #tpu.memory_space<vmem>>, vector<384x128xbf16>
    %cst = arith.constant dense<0.000000e+00> : vector<96x128xf32>
    %6 = tpu.matmul %4, %5, %cst {dimension_numbers = #tpu.dot_dimension_numbers<[1], [0], [0], [1], [0, 0, 1, 1], [], []>} : vector<96x384xbf16>, vector<384x128xbf16>, vector<96x128xf32> -> vector<96x128xf32>
    %7 = arith.addf %3, %6 : vector<96x128xf32>
    %c0_6 = arith.constant 0 : index
    %c0_7 = arith.constant 0 : index
    %8 = vector.load %arg8[%c0_6, %c0_7] : memref<96x128xf32, #tpu.memory_space<vmem>>, vector<96x128xf32>
    tpu.vector_store %arg8[%c0_6, %c0_7], %7 {strides = array<i32>} : memref<96x128xf32, #tpu.memory_space<vmem>>, vector<96x128xf32>,
    %c0_i32_8 = arith.constant 0 : i32
    %9 = arith.cmpi eq, %arg2, %c0_i32_8 : i32
    %10 = arith.extui %9 : i1 to i32
    %c0_i32_9 = arith.constant 0 : i32
    %11 = arith.cmpi ne, %10, %c0_i32_9 : i32
    scf.if %11 {
      %c0_10 = arith.constant 0 : index
      %c0_11 = arith.constant 0 : index
      %12 = vector.load %arg8[%c0_10, %c0_11] : memref<96x128xf32, #tpu.memory_space<vmem>>, vector<96x128xf32>
      %c0_12 = arith.constant 0 : index
      %c0_13 = arith.constant 0 : index
      %13 = vector.load %arg5[%c0_12, %c0_13] : memref<1x128xf32, #tpu.memory_space<vmem>>, vector<1x128xf32>
      %14 = vector.broadcast %13 : vector<1x128xf32> to vector<96x128xf32>
      %15 = arith.mulf %12, %14 : vector<96x128xf32>
      %c0_14 = arith.constant 0 : index
      %c0_15 = arith.constant 0 : index
      %16 = vector.load %arg6[%c0_14, %c0_15] : memref<1x128xf32, #tpu.memory_space<vmem>>, vector<1x128xf32>
      %17 = vector.broadcast %16 : vector<1x128xf32> to vector<96x128xf32>
      %18 = arith.addf %15, %17 : vector<96x128xf32>
      %c0_16 = arith.constant 0 : index
      %c0_17 = arith.constant 0 : index
      %19 = vector.load %arg7[%c0_16, %c0_17] : memref<96x128xf32, #tpu.memory_space<vmem>>, vector<96x128xf32>
      %20 = arith.addf %18, %19 : vector<96x128xf32>
      %cst_18 = arith.constant 0.000000e+00 : f32
      %21 = vector.broadcast %cst_18 : f32 to vector<96x128xf32>
      %22 = arith.maximumf %20, %21 : vector<96x128xf32>
      %c0_19 = arith.constant 0 : index
      %c0_20 = arith.constant 0 : index
      %23 = vector.load %arg8[%c0_19, %c0_20] : memref<96x128xf32, #tpu.memory_space<vmem>>, vector<96x128xf32>
      tpu.vector_store %arg8[%c0_19, %c0_20], %22 {strides = array<i32>} : memref<96x128xf32, #tpu.memory_space<vmem>>, vector<96x128xf32>,
    } else {
    }
    return
  }
  func.func @transform_0(%arg0: i32, %arg1: i32, %arg2: i32) -> (i32, i32) {
    %c0_i32 = arith.constant 0 : i32
    return %arg0, %arg2 : i32, i32
  }
  func.func @transform_1(%arg0: i32, %arg1: i32, %arg2: i32) -> (i32, i32) {
    %c0_i32 = arith.constant 0 : i32
    return %arg2, %arg1 : i32, i32
  }
  func.func @transform_2(%arg0: i32, %arg1: i32, %arg2: i32) -> (i32, i32) {
    %c0_i32 = arith.constant 0 : i32
    %c0_i32_0 = arith.constant 0 : i32
    return %c0_i32, %arg1 : i32, i32
  }
  func.func @transform_3(%arg0: i32, %arg1: i32, %arg2: i32) -> (i32, i32) {
    %c0_i32 = arith.constant 0 : i32
    %c0_i32_0 = arith.constant 0 : i32
    return %c0_i32, %arg1 : i32, i32
  }
  func.func @transform_4(%arg0: i32, %arg1: i32, %arg2: i32) -> (i32, i32) {
    %c0_i32 = arith.constant 0 : i32
    return %arg0, %arg1 : i32, i32
  }
  func.func @transform_5(%arg0: i32, %arg1: i32, %arg2: i32) -> (i32, i32) {
    %c0_i32 = arith.constant 0 : i32
    return %arg0, %arg1 : i32, i32
  }
}

</mosaic_0001>

<bundles_post_ra>
// kernel: tpu_custom_call.1
= control target key start
LH: loop header
LB: loop body
LE: loop exit
PB: predicated region body
PF: predicated region fallthrough
CT: control target
= control target key end

     0   :  { %10 = vsyncpa [#allocation3], 0  ;;  %s1133_s0 = inlined_call_operand.hbm [shape: bf16[96,384], index: 0, kind: input, shape index: {}]   ;;  %s1134_s1 = inlined_call_operand.hbm [shape: bf16[384,128], index: 1, kind: input, shape index: {}]   ;;  %s1135_s2 = inlined_call_operand.vmem [shape: f32[1,128], index: 2, kind: input, shape index: {}]   ;;  %s1136_s3 = inlined_call_operand.vmem [shape: f32[1,128], index: 3, kind: input, shape index: {}]   ;;  %s1137_s4 = inlined_call_operand.hbm [shape: f32[96,128], index: 4, kind: input, shape index: {}]   ;;  %s1138_s5 = inlined_call_operand.hbm [shape: f32[96,128], index: 5, kind: output, shape index: {}]  }
   0x1   :  { %11 = vsyncpa [#allocation6], 0 }
   0x2   :  { %12 = vsyncpa [#allocation4], 0  ;;  %s999_s18 = smov [#allocation5]   ;;  %s905_s22 = scalar_lea.hbm %s1134_s1, 3072 }
   0x3   :  { %s30_s19 = sshll.u32 %s999_s18, 4  ;;  %p906_p0 = scmp.ne.s32.totalorder %s1134_s1, %s905_s22  ;;  %s31_s19 = int_to_ptr.vmem [resolvable:$true] %s30_s19 }
   0x4   :  { %p909_p1 = scmp.lt.u32.totalorder %s905_s22, %s1134_s1 }
   0x6   :  { %p911_p2 = pnand %p909_p1, %p906_p0 }
   0x8   :  { %914 = shalt.err (!%p911_p2)
}
   0x9   :  { %s915_s27 = scalar_lea.vmem %s31_s19, 3072  ;;  %p920_p4 = scmp.lt.s32.totalorder %s31_s19, %s31_s19 }
   0xa   :  { %p916_p3 = scmp.ne.s32.totalorder %s31_s19, %s915_s27  ;;  %p921_p5 = scmp.lt.s32.totalorder %s915_s27, %s915_s27 }
   0xc   :  { %p922_p6 = por %p921_p5, %p920_p4 }
   0xe   :  { %p923_p7 = pnand %p922_p6, %p916_p3 }
  0x10   :  { %926 = shalt.err (!%p923_p7)
}
  0x11   :  { %s1000_s28 = smov 64   ;;  %s1001_s29 = smov 4  }
  0x12   :  { %36 = dma.hbm_to_vmem [thread:$0]  %s1134_s1, 3072, %s31_s19, [#allocation6], %s1000_s28, %s1000_s28, %s1001_s29  }
  0x13   :  { %s1002_s7 = smov [#allocation2]   ;;  %s927_s11 = scalar_lea.hbm %s1133_s0, 2304 }
  0x14   :  { %s18_s8 = sshll.u32 %s1002_s7, 4  ;;  %p928_p8 = scmp.ne.s32.totalorder %s1133_s0, %s927_s11  ;;  %s19_s8 = int_to_ptr.vmem [resolvable:$true] %s18_s8 }
  0x15   :  { %p931_p9 = scmp.lt.u32.totalorder %s927_s11, %s1133_s0 }
  0x17   :  { %p933_p10 = pnand %p931_p9, %p928_p8 }
  0x19   :  { %936 = shalt.err (!%p933_p10)
}
  0x1a   :  { %s937_s16 = scalar_lea.vmem %s19_s8, 2304  ;;  %p942_p12 = scmp.lt.s32.totalorder %s19_s8, %s19_s8 }
  0x1b   :  { %p938_p11 = scmp.ne.s32.totalorder %s19_s8, %s937_s16  ;;  %p943_p13 = scmp.lt.s32.totalorder %s937_s16, %s937_s16 }
  0x1d   :  { %p944_p0 = por %p943_p13, %p942_p12 }
  0x1f   :  { %p945_p1 = pnand %p944_p0, %p938_p11 }
  0x21   :  { %948 = shalt.err (!%p945_p1)
}
  0x22   :  { %s1003_s1 = smov 192   ;;  %s1004_s17 = smov 12  }
  0x23   :  { %24 = dma.hbm_to_vmem [thread:$0]  %s1133_s0, 2304, %s19_s8, [#allocation3], %s1003_s1, %s1003_s1, %s1004_s17  }
  0x24   :  { %s1005_s20 = smov [#allocation7]   ;;  %s949_s24 = scalar_lea.hbm %s1137_s4, 1536 }
  0x25   :  { %s46_s21 = sshll.u32 %s1005_s20, 4  ;;  %p950_p2 = scmp.ne.s32.totalorder %s1137_s4, %s949_s24  ;;  %s47_s21 = int_to_ptr.vmem [resolvable:$true] %s46_s21 }
  0x26   :  { %p953_p3 = scmp.lt.u32.totalorder %s949_s24, %s1137_s4 }
  0x28   :  { %p955_p4 = pnand %p953_p3, %p950_p2 }
  0x2a   :  { %958 = shalt.err (!%p955_p4)
}
  0x2b   :  { %s959_s29 = scalar_lea.vmem %s47_s21, 1536  ;;  %p964_p6 = scmp.lt.s32.totalorder %s47_s21, %s47_s21 }
  0x2c   :  { %p960_p5 = scmp.ne.s32.totalorder %s47_s21, %s959_s29  ;;  %p965_p7 = scmp.lt.s32.totalorder %s959_s29, %s959_s29 }
  0x2e   :  { %p966_p8 = por %p965_p7, %p964_p6 }
  0x30   :  { %p967_p9 = pnand %p966_p8, %p960_p5 }
  0x32   :  { %970 = shalt.err (!%p967_p9)
}
  0x33   :  { %s1006_s0 = smov 128   ;;  %s1007_s30 = smov 8  }
  0x34   :  { %52 = dma.hbm_to_vmem [thread:$0]  %s1137_s4, 1536, %s47_s21, [#allocation6], %s1006_s0, %s1006_s0, %s1007_s30  }
  0x35   :  { %993 = dma.done.wait [#allocation3], 2304  }
  0x36   :  { %994 = vsyncadd [#allocation3], 4294964992 }
  0x37   :  { %995 = dma.done.wait [#allocation6], 4608  }
  0x38   :  { %996 = vsyncadd [#allocation6], 4294962688  ;;  %v857_v0 = vld [vmem:[#allocation5 + $0x40] sm:$0xff]   ;;  %v860_v3 = vld [vmem:[#allocation5 + $0x48] sm:$0xff]  }
  0x39   :  { %v858_v1 = vld [vmem:[#allocation5] sm:$0xff]   ;;  %752 = vmatprep.subr.bf16.mxu0 %v857_v0  ;;  %v861_v4 = vld [vmem:[#allocation5 + $0x8] sm:$0xff]   ;;  %v863_v6 = vld [vmem:[#allocation5 + $0x50] sm:$0xff]  }
  0x3a   :  { %v859_v2 = vld [vmem:[#allocation5 + $0x80] sm:$0xff]   ;;  %753 = vmatpush3.bf16.msra.mxu0 %v858_v1  ;;  %v862_v5 = vld [vmem:[#allocation5 + $0x88] sm:$0xff]   ;;  %v864_v7 = vld [vmem:[#allocation5 + $0x10] sm:$0xff]  }
  0x3b   :  { %818 = vmatprep.subr.bf16.mxu1 %v859_v2  ;;  %754 = vmatprep.subr.bf16.mxu0 %v860_v3  ;;  %v865_v8 = vld [vmem:[#allocation5 + $0x90] sm:$0xff]   ;;  %v866_v9 = vld [vmem:[#allocation5 + $0x58] sm:$0xff]   ;;  %v869_v12 = vld [vmem:[#allocation5 + $0x60] sm:$0xff]  }
  0x3c   :  { %819 = vmatpush3.bf16.msra.mxu1 %v859_v2  ;;  %v867_v10 = vld [vmem:[#allocation5 + $0x18] sm:$0xff]   ;;  %v871_v13 = vld [vmem:[#allocation5 + $0xa0] sm:$0xff]   ;;  %v872_v15 = vld [vmem:[#allocation5 + $0x68] sm:$0xff]  }
  0x3d   :  { %820 = vmatprep.subr.bf16.mxu1 %v862_v5  ;;  %v868_v11 = vld [vmem:[#allocation5 + $0x98] sm:$0xff]   ;;  %v870_v14 = vld [vmem:[#allocation5 + $0x20] sm:$0xff]   ;;  %v874_v16 = vld [vmem:[#allocation5 + $0xa8] sm:$0xff]  }
  0x3e   :  { %755 = vmatpush3.bf16.msra.mxu0 %v861_v4  ;;  %v873_v17 = vld [vmem:[#allocation5 + $0x28] sm:$0xff]   ;;  %v875_v18 = vld [vmem:[#allocation5 + $0x70] sm:$0xff]   ;;  %v878_v21 = vld [vmem:[#allocation5 + $0x78] sm:$0xff]  }
  0x3f   :  { %756 = vmatprep.subr.bf16.mxu0 %v863_v6  ;;  %v876_v19 = vld [vmem:[#allocation5 + $0x30] sm:$0xff]   ;;  %v880_v22 = vld [vmem:[#allocation5 + $0xb8] sm:$0xff]   ;;  %v893_v32 = vld [vmem:[#allocation2 + $0x50] ss:$12 sps:$4 sm:$0xff]  }
  0x40   :  { %821 = vmatpush3.bf16.msra.mxu1 %v862_v5  ;;  %v877_v20 = vld [vmem:[#allocation5 + $0xb0] sm:$0xff]   ;;  %v884_v24 = vld [vmem:[#allocation2 + $0x8] ss:$12 sps:$4 sm:$0xff]   ;;  %v891_v34 = vld [vmem:[#allocation2 + $0x30] ss:$12 sps:$4 sm:$0xff]  }
  0x41   :  { %822 = vmatprep.subr.bf16.mxu1 %v865_v8  ;;  %v883_v23 = vld [vmem:[#allocation2 + $0x4] ss:$12 sps:$4 sm:$0xff]   ;;  %v879_v25 = vld [vmem:[#allocation5 + $0x38] sm:$0xff]   ;;  %834 = vmatprep.mubr.bf16.mxu1 %v884_v24  ;;  %v889_v31 = vld [vmem:[#allocation2 + $0x34] ss:$12 sps:$4 sm:$0xff]  }
  0x42   :  { %757 = vmatpush3.bf16.msra.mxu0 %v864_v7  ;;  %435 = vmatprep.mubr.bf16.mxu0 %v883_v23  ;;  %v881_v26 = vld [vmem:[#allocation2] ss:$12 sps:$4 sm:$0xff]   ;;  %v886_v27 = vld [vmem:[#allocation2 + $0x1c] ss:$12 sps:$4 sm:$0xff]   ;;  %v892_v29 = vld [vmem:[#allocation2 + $0x38] ss:$12 sps:$4 sm:$0xff]  }
  0x43   :  { %758 = vmatprep.subr.bf16.mxu0 %v866_v9  ;;  %v885_v28 = vld [vmem:[#allocation2 + $0x20] ss:$12 sps:$4 sm:$0xff]   ;;  %v888_v30 = vld [vmem:[#allocation2 + $0x18] ss:$12 sps:$4 sm:$0xff]   ;;  %v900_v33 = vld [vmem:[#allocation2 + $0x68] ss:$12 sps:$4 sm:$0xff]  }
  0x44   :  { %823 = vmatpush3.bf16.msra.mxu1 %v865_v8  ;;  %v894_v35 = vld [vmem:[#allocation2 + $0x4c] ss:$12 sps:$4 sm:$0xff]   ;;  %v896_v37 = vld [vmem:[#allocation2 + $0x48] ss:$12 sps:$4 sm:$0xff]   ;;  %v897_v38 = vld [vmem:[#allocation2 + $0x64] ss:$12 sps:$4 sm:$0xff]  }
  0x45   :  { %824 = vmatprep.subr.bf16.mxu1 %v868_v11  ;;  %v901_v36 = vld [vmem:[#allocation2 + $0x80] ss:$12 sps:$4 sm:$0xff]   ;;  %v902_v40 = vld [vmem:[#allocation2 + $0x7c] ss:$12 sps:$4 sm:$0xff]   ;;  %v904_v41 = vld [vmem:[#allocation2 + $0x78] ss:$12 sps:$4 sm:$0xff]  }
  0x46   :  { %759 = vmatpush3.bf16.msra.mxu0 %v867_v10  ;;  %v899_v39 = vld [vmem:[#allocation2 + $0x60] ss:$12 sps:$4 sm:$0xff]   ;;  %v642_v58 = vld [vmem:[#allocation7] sm:$0xff]  ;;  %v643_v1 = vld [vmem:[#allocation7 + $0x8] sm:$0xff] }
  0x47   :  { %760 = vmatprep.subr.bf16.mxu0 %v869_v12  ;;  %v1081_v52 = vld [vmem:[%s1135_s2] ss:$0 sm:$0xff]  ;;  %v645_v23 = vld [vmem:[#allocation7 + $0x18] sm:$0xff]  ;;  %s1008_s2 = smov [#allocation8]  }
  0x48   :  { %825 = vmatpush3.bf16.msra.mxu1 %v868_v11  ;;  %v1086_v55 = vld [vmem:[%s1136_s3] ss:$0 sm:$0xff]  ;;  %s695_s3 = sshll.u32 %s1008_s2, 4  ;;  %s696_s3 = int_to_ptr.vmem [resolvable:$true] %s695_s3 }
  0x49   :  { %826 = vmatprep.subr.bf16.mxu1 %v871_v13  ;;  %s971_s11 = scalar_lea.vmem %s696_s3, 1536  ;;  %p976_p11 = scmp.lt.s32.totalorder %s696_s3, %s696_s3 }
  0x4a   :  { %761 = vmatpush3.bf16.msra.mxu0 %v870_v14  ;;  %p972_p10 = scmp.ne.s32.totalorder %s696_s3, %s971_s11  ;;  %p977_p12 = scmp.lt.s32.totalorder %s971_s11, %s971_s11 }
  0x4b   :  { %762 = vmatprep.subr.bf16.mxu0 %v872_v15 }
  0x4c   :  { %827 = vmatpush3.bf16.msra.mxu1 %v871_v13  ;;  %p978_p13 = por %p977_p12, %p976_p11 }
  0x4d   :  { %828 = vmatprep.subr.bf16.mxu1 %v874_v16 }
  0x4e   :  { %763 = vmatpush3.bf16.msra.mxu0 %v873_v17  ;;  %p979_p0 = pnand %p978_p13, %p972_p10 }
  0x4f   :  { %764 = vmatprep.subr.bf16.mxu0 %v875_v18 }
  0x50   :  { %829 = vmatpush3.bf16.msra.mxu1 %v874_v16  ;;  %v644_v16 = vld [vmem:[#allocation7 + $0x10] sm:$0xff] }
  0x51   :  { %830 = vmatprep.subr.bf16.mxu1 %v877_v20 }
  0x52   :  { %765 = vmatpush3.bf16.msra.mxu0 %v876_v19 }
  0x53   :  { %766 = vmatprep.subr.bf16.mxu0 %v878_v21 }
  0x54   :  { %831 = vmatpush3.bf16.msra.mxu1 %v877_v20 }
  0x55   :  { %832 = vmatprep.subr.bf16.mxu1 %v880_v22 }
  0x56   :  { %767 = vmatpush3.bf16.msra.mxu0 %v879_v25 }
  0x58   :  { %833 = vmatpush3.bf16.msra.mxu1 %v880_v22 }
  0x59   :  { %436 = vmatmul.mubr.bf16.vlgmr.msra.gmra.mrb[0].mxu0 %v881_v26 }
  0x5a   :  { %443 = vmatprep.mubr.bf16.mxu0 %v886_v27 }
  0x5b   :  { %835 = vmatmul.mubr.bf16.vlgmr.msra.gmra.mrb[0].mxu1 %v885_v28 }
  0x5c   :  { %838 = vmatprep.mubr.bf16.mxu1 %v892_v29 }
  0x61   :  { %444 = vmatmul.mubr.bf16.gmra.mrb[4].mxu0 %v888_v30 }
  0x62   :  { %451 = vmatprep.mubr.bf16.mxu0 %v889_v31 }
  0x63   :  { %839 = vmatmul.mubr.bf16.gmra.mrb[4].mxu1 %v893_v32 }
  0x64   :  { %842 = vmatprep.mubr.bf16.mxu1 %v900_v33 }
  0x69   :  { %452 = vmatmul.mubr.bf16.gmra.mrb[8].mxu0 %v891_v34 }
  0x6a   :  { %459 = vmatprep.mubr.bf16.mxu0 %v894_v35 }
  0x6b   :  { %843 = vmatmul.mubr.bf16.gmra.mrb[8].mxu1 %v901_v36 }
  0x71   :  { %460 = vmatmul.mubr.bf16.gmra.mrb[12].mxu0 %v896_v37 }
  0x72   :  { %467 = vmatprep.mubr.bf16.mxu0 %v897_v38  ;;  %v646_v38 = vld [vmem:[#allocation7 + $0x20] sm:$0xff] }
  0x79   :  { %468 = vmatmul.mubr.bf16.gmra.mrb[16].mxu0 %v899_v39 }
  0x7a   :  { %475 = vmatprep.mubr.bf16.mxu0 %v902_v40 }
  0x81   :  { %476 = vmatmul.mubr.bf16.gmra.mrb[20].mxu0 %v904_v41 }
 0x12c   :  { %v768_v42 = vpop.f32.mrb[0].mxu0 }
 0x12d   :  { %v769_v43 = vpop.f32.mrb[1].mxu0 }
 0x12e   :  { %v770_v44 = vadd.f32 %v769_v43, %v768_v42  ;;  %v771_v45 = vpop.f32.mrb[2].mxu0  ;;  %v836_v46 = vpop.f32.mrb[0].mxu1 }
 0x12f   :  { %v772_v47 = vpop.f32.mrb[3].mxu0  ;;  %v518_v48 = vpop.f32.mrb[1].mxu1 }
 0x130   :  { %v773_v49 = vadd.f32 %v772_v47, %v771_v45  ;;  %v519_v50 = vadd.f32 %v770_v44, %v518_v48  ;;  %v837_v51 = vpop.f32.mrb[2].mxu1  ;;  %v647_v44 = vld [vmem:[#allocation7 + $0x28] sm:$0xff] }
 0x131   :  { %v521_v53 = vpop.f32.mrb[3].mxu1 }
 0x132   :  { %v522_v54 = vadd.f32 %v773_v49, %v521_v53  ;;  %v611_v56 = vmul.f32 %v1081_v52, %v519_v50 }
 0x134   :  { %v774_v57 = vpop.f32.mrb[4].mxu0  ;;  %v630_v60 = vadd.f32 %v1086_v55, %v611_v56  ;;  %v612_v61 = vmul.f32 %v1081_v52, %v522_v54 }
 0x135   :  { %v775_v59 = vpop.f32.mrb[5].mxu0 }
 0x136   :  { %v776_v62 = vadd.f32 %v775_v59, %v774_v57  ;;  %v777_v63 = vpop.f32.mrb[6].mxu0  ;;  %v840_v0 = vpop.f32.mrb[4].mxu1  ;;  %v654_v4 = vadd.f32 %v642_v58, %v630_v60  ;;  %v631_v5 = vadd.f32 %v1086_v55, %v612_v61  ;;  %v648_v58 = vld [vmem:[#allocation7 + $0x30] sm:$0xff] }
 0x137   :  { %v778_v2 = vpop.f32.mrb[7].mxu0  ;;  %v534_v3 = vpop.f32.mrb[5].mxu1 }
 0x138   :  { %v527_v6 = vadd.f32 %v836_v46, %v776_v62  ;;  %v779_v7 = vadd.f32 %v778_v2, %v777_v63  ;;  %v841_v8 = vpop.f32.mrb[6].mxu1  ;;  %v666_v10 = vmax.f32 %v654_v4, 0.0  ;;  %v655_v11 = vadd.f32 %v643_v1, %v631_v5  ;;  %v649_v1 = vld [vmem:[#allocation7 + $0x38] sm:$0xff] }
 0x139   :  { %v537_v9 = vpop.f32.mrb[7].mxu1 }
 0x13a   :  { %v530_v12 = vadd.f32 %v837_v51, %v779_v7  ;;  %678 = vst [vmem:[#allocation8] sm:$0xff] %v666_v10  ;;  %v667_v13 = vmax.f32 %v655_v11, 0.0  ;;  %v613_v14 = vmul.f32 %v1081_v52, %v527_v6 }
 0x13c   :  { %v780_v15 = vpop.f32.mrb[8].mxu0  ;;  %679 = vst [vmem:[#allocation8 + $0x8] sm:$0xff] %v667_v13  ;;  %v632_v18 = vadd.f32 %v1086_v55, %v613_v14  ;;  %v614_v19 = vmul.f32 %v1081_v52, %v530_v12  ;;  %v650_v12 = vld [vmem:[#allocation7 + $0x40] sm:$0xff] }
 0x13d   :  { %v781_v17 = vpop.f32.mrb[9].mxu0 }
 0x13e   :  { %v782_v20 = vadd.f32 %v781_v17, %v780_v15  ;;  %v783_v21 = vpop.f32.mrb[10].mxu0  ;;  %v1095_v22 = vpop.f32.mrb[8].mxu1  ;;  %v656_v26 = vadd.f32 %v644_v16, %v632_v18  ;;  %v633_v27 = vadd.f32 %v1086_v55, %v614_v19  ;;  %v651_v18 = vld [vmem:[#allocation7 + $0x48] sm:$0xff] }
 0x13f   :  { %v784_v24 = vpop.f32.mrb[11].mxu0  ;;  %v550_v25 = vpop.f32.mrb[9].mxu1 }
 0x140   :  { %v785_v28 = vadd.f32 %v784_v24, %v783_v21  ;;  %v535_v29 = vadd.f32 %v782_v20, %v534_v3  ;;  %v1098_v30 = vpop.f32.mrb[10].mxu1  ;;  %v668_v32 = vmax.f32 %v656_v26, 0.0  ;;  %v657_v33 = vadd.f32 %v645_v23, %v633_v27 }
 0x141   :  { %v553_v31 = vpop.f32.mrb[11].mxu1 }
 0x142   :  { %v538_v34 = vadd.f32 %v785_v28, %v537_v9  ;;  %680 = vst [vmem:[#allocation8 + $0x10] sm:$0xff] %v668_v32  ;;  %v669_v35 = vmax.f32 %v657_v33, 0.0  ;;  %v615_v36 = vmul.f32 %v1081_v52, %v535_v29 }
 0x144   :  { %v786_v37 = vpop.f32.mrb[12].mxu0  ;;  %681 = vst [vmem:[#allocation8 + $0x18] sm:$0xff] %v669_v35  ;;  %v634_v40 = vadd.f32 %v1086_v55, %v615_v36  ;;  %v616_v41 = vmul.f32 %v1081_v52, %v538_v34  ;;  %v653_v34 = vld [vmem:[#allocation7 + $0x58] sm:$0xff] }
 0x145   :  { %v787_v39 = vpop.f32.mrb[13].mxu0 }
 0x146   :  { %v788_v42 = vadd.f32 %v787_v39, %v786_v37  ;;  %v789_v43 = vpop.f32.mrb[14].mxu0  ;;  %v658_v46 = vadd.f32 %v646_v38, %v634_v40  ;;  %v635_v47 = vadd.f32 %v1086_v55, %v616_v41 }
 0x147   :  { %v790_v45 = vpop.f32.mrb[15].mxu0 }
 0x148   :  { %v543_v48 = vadd.f32 %v840_v0, %v788_v42  ;;  %v791_v49 = vadd.f32 %v790_v45, %v789_v43  ;;  %v670_v50 = vmax.f32 %v658_v46, 0.0  ;;  %v659_v51 = vadd.f32 %v647_v44, %v635_v47 }
 0x14a   :  { %v546_v53 = vadd.f32 %v841_v8, %v791_v49  ;;  %682 = vst [vmem:[#allocation8 + $0x20] sm:$0xff] %v670_v50  ;;  %v671_v54 = vmax.f32 %v659_v51, 0.0  ;;  %v617_v56 = vmul.f32 %v1081_v52, %v543_v48 }
 0x14c   :  { %v792_v57 = vpop.f32.mrb[16].mxu0  ;;  %683 = vst [vmem:[#allocation8 + $0x28] sm:$0xff] %v671_v54  ;;  %v636_v60 = vadd.f32 %v1086_v55, %v617_v56  ;;  %v618_v61 = vmul.f32 %v1081_v52, %v546_v53 }
 0x14d   :  { %v793_v59 = vpop.f32.mrb[17].mxu0 }
 0x14e   :  { %v794_v62 = vadd.f32 %v793_v59, %v792_v57  ;;  %v795_v63 = vpop.f32.mrb[18].mxu0  ;;  %v660_v2 = vadd.f32 %v648_v58, %v636_v60  ;;  %v637_v3 = vadd.f32 %v1086_v55, %v618_v61 }
 0x14f   :  { %v796_v0 = vpop.f32.mrb[19].mxu0 }
 0x150   :  { %v797_v4 = vadd.f32 %v796_v0, %v795_v63  ;;  %v551_v5 = vadd.f32 %v794_v62, %v550_v25  ;;  %v672_v6 = vmax.f32 %v660_v2, 0.0  ;;  %v661_v7 = vadd.f32 %v649_v1, %v637_v3 }
 0x152   :  { %v554_v8 = vadd.f32 %v797_v4, %v553_v31  ;;  %684 = vst [vmem:[#allocation8 + $0x30] sm:$0xff] %v672_v6  ;;  %v673_v9 = vmax.f32 %v661_v7, 0.0  ;;  %v619_v10 = vmul.f32 %v1081_v52, %v551_v5  ;;  %v652_v31 = vld [vmem:[#allocation7 + $0x50] sm:$0xff] }
 0x154   :  { %v798_v11 = vpop.f32.mrb[20].mxu0  ;;  %685 = vst [vmem:[#allocation8 + $0x38] sm:$0xff] %v673_v9  ;;  %v638_v14 = vadd.f32 %v1086_v55, %v619_v10  ;;  %v620_v15 = vmul.f32 %v1081_v52, %v554_v8 }
 0x155   :  { %v799_v13 = vpop.f32.mrb[21].mxu0 }
 0x156   :  { %v800_v16 = vadd.f32 %v799_v13, %v798_v11  ;;  %v801_v17 = vpop.f32.mrb[22].mxu0  ;;  %v662_v20 = vadd.f32 %v650_v12, %v638_v14  ;;  %v639_v21 = vadd.f32 %v1086_v55, %v620_v15 }
 0x157   :  { %v802_v19 = vpop.f32.mrb[23].mxu0 }
 0x158   :  { %v559_v23 = vadd.f32 %v1095_v22, %v800_v16  ;;  %v803_v24 = vadd.f32 %v802_v19, %v801_v17  ;;  %v674_v25 = vmax.f32 %v662_v20, 0.0  ;;  %v663_v26 = vadd.f32 %v651_v18, %v639_v21 }
 0x15a   :  { %v562_v27 = vadd.f32 %v1098_v30, %v803_v24  ;;  %686 = vst [vmem:[#allocation8 + $0x40] sm:$0xff] %v674_v25  ;;  %v675_v28 = vmax.f32 %v663_v26, 0.0  ;;  %v621_v29 = vmul.f32 %v1081_v52, %v559_v23 }
 0x15c   :  { %687 = vst [vmem:[#allocation8 + $0x48] sm:$0xff] %v675_v28  ;;  %v640_v32 = vadd.f32 %v1086_v55, %v621_v29  ;;  %v622_v33 = vmul.f32 %v1081_v52, %v562_v27 }
 0x15e   :  { %v664_v35 = vadd.f32 %v652_v31, %v640_v32  ;;  %v641_v36 = vadd.f32 %v1086_v55, %v622_v33 }
 0x160   :  { %v676_v22 = vmax.f32 %v664_v35, 0.0  ;;  %v665_v37 = vadd.f32 %v653_v34, %v641_v36 }
 0x162   :  { %688 = vst [vmem:[#allocation8 + $0x50] sm:$0xff] %v676_v22  ;;  %v677_v30 = vmax.f32 %v665_v37, 0.0 }
 0x164   :  { %689 = vst [vmem:[#allocation8 + $0x58] sm:$0xff] %v677_v30 }
 0x165   :  { %982 = shalt.err (!%p979_p0)
}
 0x166   :  { %s983_s14 = scalar_lea.hbm %s1138_s5, 1536 }
 0x167   :  { %p984_p1 = scmp.ne.s32.totalorder %s1138_s5, %s983_s14  ;;  %p987_p2 = scmp.lt.u32.totalorder %s983_s14, %s1138_s5 }
 0x169   :  { %p989_p3 = pnand %p987_p2, %p984_p1 }
 0x16b   :  { %992 = shalt.err (!%p989_p3)
}
 0x16c   :  { %701 = dma.vmem_to_hbm [thread:$0]  %s696_s3, 1536, %s1138_s5, [#allocation4], %s1006_s0, %s1006_s0, %s1007_s30  }
 0x16d   :  { %997 = dma.done.wait [#allocation4], 1536  }
 0x16e   :  { %998 = vsyncadd [#allocation4], 4294965760 }
 0x16f   :  { %705 = vsyncpa [#allocation3], 1 }
 0x170   :  { %706 = vsyncpa [#allocation6], 1 }
 0x171   :  { %707 = vsyncpa [#allocation4], 1 }

</bundles_post_ra>
